<compile_context>
chip_gen: v7x
topology: tpu7x:2x2x1
jax: 0.10.0
libtpu: 0.0.40
codegen_flags: <defaults>
</compile_context>

<pallas_src>
import functools

import jax
import jax.numpy as jnp
from jax.experimental import pallas as pl
from jax.experimental.pallas import tpu as pltpu

_LANE = 128


def _round_up(x, m):
    return ((x + m - 1) // m) * m


# ----------------------------- Pallas kernel ------------------------------ #
def _surface_mlp_kernel(x_ref, w1_ref, b1_ref, w2_ref, b2_ref, w3_ref, b3_ref,
                        o_ref, *, compute_dtype):
    """Fused 3-layer MLP with tanh activations; all tiles resident in VMEM.

    Matmul operands are fed to the MXU in `compute_dtype` (f32 or bf16); the
    accumulation, bias adds and tanh stay in f32.
    """
    x = x_ref[...].astype(compute_dtype)
    h = jnp.tanh(
        jnp.dot(x, w1_ref[...], preferred_element_type=jnp.float32)
        + b1_ref[...])
    h = jnp.tanh(
        jnp.dot(h.astype(compute_dtype), w2_ref[...],
                preferred_element_type=jnp.float32) + b2_ref[...])
    out = (jnp.dot(h.astype(compute_dtype), w3_ref[...],
                   preferred_element_type=jnp.float32) + b3_ref[...])
    o_ref[...] = out.astype(o_ref.dtype)


def surface_mlp_pallas(x2d, params, *, batch_tile=512,
                       matmul_dtype=jnp.float32):
    """Runs the fused MLP on a flattened (N, in_dim) input.

    `params` are the (already lane-padded) kernel parameters from
    `init_surface_model_params`.  Returns the lane-padded output (N, out_pad);
    the caller slices the logical output columns.
    """
    w1, b1, w2, b2, w3, b3 = params
    n, in_dim = x2d.shape
    hidden = w1.shape[1]        # padded hidden (multiple of 128)
    out_pad = w3.shape[1]       # padded output features (multiple of 128)

    # MXU operand dtype (bf16 halves weight HBM traffic on v6e/v7x).
    w1m = w1.astype(matmul_dtype)
    w2m = w2.astype(matmul_dtype)
    w3m = w3.astype(matmul_dtype)

    # Row tile: as large as requested, multiple of 8, and at least 2 grid
    # steps when possible so both v7x TensorCores get work.
    tile = min(batch_tile, _round_up(n, 8))
    tile = max(8, (tile // 8) * 8)
    if pl.cdiv(n, tile) < 2 and n > 8:
        tile = max(8, _round_up(pl.cdiv(n, 2), 8))
    grid = (pl.cdiv(n, tile),)   # last block may be partial; Pallas masks it.

    rep = lambda i: (0, 0)       # weights/biases: same block every grid step

    w_bytes = jnp.dtype(matmul_dtype).itemsize
    flops = 2 * n * (in_dim * hidden + hidden * hidden + hidden * out_pad)
    transcendentals = 2 * n * hidden
    bytes_accessed = (n * in_dim * 4 + n * out_pad * 4
                      + (in_dim * hidden + hidden * hidden
                         + hidden * out_pad) * w_bytes
                      + (2 * hidden + out_pad) * 4)

    kernel = functools.partial(_surface_mlp_kernel,
                               compute_dtype=matmul_dtype)

    out = pl.pallas_call(
        kernel,
        out_shape=jax.ShapeDtypeStruct((n, out_pad), jnp.float32),
        grid_spec=pltpu.PrefetchScalarGridSpec(
            num_scalar_prefetch=0,
            grid=grid,
            in_specs=[
                pl.BlockSpec((tile, in_dim), lambda i: (i, 0)),
                pl.BlockSpec((in_dim, hidden), rep),
                pl.BlockSpec((1, hidden), rep),
                pl.BlockSpec((hidden, hidden), rep),
                pl.BlockSpec((1, hidden), rep),
                pl.BlockSpec((hidden, out_pad), rep),
                pl.BlockSpec((1, out_pad), rep),
            ],
            out_specs=pl.BlockSpec((tile, out_pad), lambda i: (i, 0)),
        ),
        compiler_params=pltpu.CompilerParams(
            dimension_semantics=("parallel",),
            vmem_limit_bytes=32 * 1024 * 1024),
        cost_estimate=pl.CostEstimate(flops=flops,
                                      transcendentals=transcendentals,
                                      bytes_accessed=bytes_accessed),
    )(x2d, w1m, b1, w2m, b2, w3m, b3)

    return out


# --------------------------- SurfaceModel wrapper -------------------------- #
def init_surface_model_params(key, s_dim, output_dim, latent_dim,
                              hidden_units=64):
    """Parameter init matching the PyTorch module, padded for the kernel.

    Weights: Xavier-uniform over the *logical* fan-in/out (as in the module);
    biases: uniform(-1/sqrt(fan_in), 1/sqrt(fan_in)) like nn.Linear default.
    Hidden and output feature dims are zero-padded up to multiples of 128 so
    the kernel works on lane-dense tiles; zero padding is mathematically exact
    (padded hidden units are tanh(0)=0 and hit zero weight rows downstream).
    Stored as (in, out) weights and (1, out) bias rows.
    """
    in_dim = s_dim * 2 + latent_dim
    out_dim = s_dim * 2 * output_dim
    hid_pad = _round_up(hidden_units, _LANE)
    out_pad = _round_up(out_dim, _LANE)

    logical = [(in_dim, hidden_units), (hidden_units, hidden_units),
               (hidden_units, out_dim)]
    padded = [(in_dim, hid_pad), (hid_pad, hid_pad), (hid_pad, out_pad)]

    params = []
    for (fi, fo), (pi, po) in zip(logical, padded):
        key, kw, kb = jax.random.split(key, 3)
        limit_w = (6.0 / (fi + fo)) ** 0.5
        w = jax.random.uniform(kw, (fi, fo), jnp.float32, -limit_w, limit_w)
        limit_b = 1.0 / (fi ** 0.5)
        b = jax.random.uniform(kb, (1, fo), jnp.float32, -limit_b, limit_b)
        w_p = jnp.zeros((pi, po), jnp.float32).at[:fi, :fo].set(w)
        b_p = jnp.zeros((1, po), jnp.float32).at[:, :fo].set(b)
        params.extend([w_p, b_p])
    return tuple(params)


@functools.partial(jax.jit, static_argnames=("s_dim", "output_dim",
                                             "latent_dim", "matmul_dtype",
                                             "batch_tile"))
def surface_model_forward(i, params, *, s_dim, output_dim, latent_dim,
                          matmul_dtype=jnp.float32, batch_tile=512):
    """Forward pass equivalent of SurfaceModel.forward.

    Returns (real, imag), each of shape (-1, output_dim, s_dim), float32."""
    in_dim = s_dim * 2 + latent_dim
    out_dim = s_dim * 2 * output_dim
    x2d = i.reshape(-1, in_dim).astype(jnp.float32)
    out = surface_mlp_pallas(x2d, params, batch_tile=batch_tile,
                             matmul_dtype=matmul_dtype)
    out = out[:, :out_dim].reshape(-1, 2 * output_dim, s_dim)
    real = out[:, :output_dim, :]
    imag = out[:, output_dim:, :]
    return real, imag


# pure-JAX reference for correctness checking (uses the padded params; the
# zero padding contributes nothing, so slicing gives the logical result).
def _surface_model_ref(i, params, s_dim, output_dim, latent_dim):
    w1, b1, w2, b2, w3, b3 = params
    out_dim = s_dim * 2 * output_dim
    x = i.reshape(-1, s_dim * 2 + latent_dim).astype(jnp.float32)
    h = jnp.tanh(x @ w1 + b1)
    h = jnp.tanh(h @ w2 + b2)
    out = (h @ w3 + b3)[:, :out_dim].reshape(-1, 2 * output_dim, s_dim)
    return out[:, :output_dim, :], out[:, output_dim:, :]


if __name__ == "__main__":
    # Small shapes consistent with the module's forward.
    s_dim, output_dim, latent_dim, hidden_units = 4, 3, 8, 64
    batch = 384
    in_dim = s_dim * 2 + latent_dim  # 16

    key = jax.random.PRNGKey(0)
    key, k_in, k_par = jax.random.split(key, 3)

    x = jax.random.normal(k_in, (batch, in_dim), jnp.float32)
    params = init_surface_model_params(k_par, s_dim, output_dim, latent_dim,
                                       hidden_units)

    # f32 path (exact vs reference; safe default on v5e).
    real, imag = surface_model_forward(
        x, params, s_dim=s_dim, output_dim=output_dim, latent_dim=latent_dim)
    real = jax.block_until_ready(real)
    imag = jax.block_until_ready(imag)

    real_ref, imag_ref = _surface_model_ref(x, params, s_dim, output_dim,
                                            latent_dim)
    assert real.shape == (batch, output_dim, s_dim)
    assert imag.shape == (batch, output_dim, s_dim)
    assert jnp.allclose(real, real_ref, atol=1e-5, rtol=1e-5)
    assert jnp.allclose(imag, imag_ref, atol=1e-5, rtol=1e-5)

    # bf16 matmul-operand path (v6e/v7x MXU fast path, f32 accumulation).
    real_bf, imag_bf = surface_model_forward(
        x, params, s_dim=s_dim, output_dim=output_dim, latent_dim=latent_dim,
        matmul_dtype=jnp.bfloat16)
    real_bf = jax.block_until_ready(real_bf)
    imag_bf = jax.block_until_ready(imag_bf)
    assert jnp.allclose(real_bf, real_ref, atol=5e-2, rtol=5e-2)
    assert jnp.allclose(imag_bf, imag_ref, atol=5e-2, rtol=5e-2)

    print("KERNEL_OK")
</pallas_src>

<mosaic_0001>
module attributes {stable_mosaic.version = 11 : i64} {
  func.func @_surface_mlp_kernel(%arg0: i32, %arg1: memref<192x16xf32, #tpu.memory_space<vmem>>, %arg2: memref<16x128xf32, #tpu.memory_space<vmem>>, %arg3: memref<1x128xf32, #tpu.memory_space<vmem>>, %arg4: memref<128x128xf32, #tpu.memory_space<vmem>>, %arg5: memref<1x128xf32, #tpu.memory_space<vmem>>, %arg6: memref<128x128xf32, #tpu.memory_space<vmem>>, %arg7: memref<1x128xf32, #tpu.memory_space<vmem>>, %arg8: memref<192x128xf32, #tpu.memory_space<vmem>>) attributes {dimension_semantics = [#tpu.dimension_semantics<parallel>], iteration_bounds = array<i64: 2>, scalar_prefetch = 0 : i64, scratch_operands = 0 : i64, tpu.core_type = #tpu.core_type<tc>, window_params = [{transform_indices = @transform_0, window_bounds = array<i64: 192, 16>}, {pipeline_mode = #tpu.pipeline_mode<synchronous>, transform_indices = @transform_1, window_bounds = array<i64: 16, 128>}, {pipeline_mode = #tpu.pipeline_mode<synchronous>, transform_indices = @transform_2, window_bounds = array<i64: 1, 128>}, {pipeline_mode = #tpu.pipeline_mode<synchronous>, transform_indices = @transform_3, window_bounds = array<i64: 128, 128>}, {pipeline_mode = #tpu.pipeline_mode<synchronous>, transform_indices = @transform_4, window_bounds = array<i64: 1, 128>}, {pipeline_mode = #tpu.pipeline_mode<synchronous>, transform_indices = @transform_5, window_bounds = array<i64: 128, 128>}, {pipeline_mode = #tpu.pipeline_mode<synchronous>, transform_indices = @transform_6, window_bounds = array<i64: 1, 128>}, {transform_indices = @transform_7, window_bounds = array<i64: 192, 128>}]} {
    %c0 = arith.constant 0 : index
    %c0_0 = arith.constant 0 : index
    %0 = vector.load %arg1[%c0, %c0_0] : memref<192x16xf32, #tpu.memory_space<vmem>>, vector<192x16xf32>
    %c0_1 = arith.constant 0 : index
    %c0_2 = arith.constant 0 : index
    %1 = vector.load %arg2[%c0_1, %c0_2] : memref<16x128xf32, #tpu.memory_space<vmem>>, vector<16x128xf32>
    %cst = arith.constant dense<0.000000e+00> : vector<192x128xf32>
    %2 = tpu.matmul %0, %1, %cst {dimension_numbers = #tpu.dot_dimension_numbers<[1], [0], [0], [1], [0, 0, 1, 1], [], []>} : vector<192x16xf32>, vector<16x128xf32>, vector<192x128xf32> -> vector<192x128xf32>
    %c0_3 = arith.constant 0 : index
    %c0_4 = arith.constant 0 : index
    %3 = vector.load %arg3[%c0_3, %c0_4] : memref<1x128xf32, #tpu.memory_space<vmem>>, vector<1x128xf32>
    %4 = vector.broadcast %3 : vector<1x128xf32> to vector<192x128xf32>
    %5 = arith.addf %2, %4 : vector<192x128xf32>
    %6 = math.tanh %5 : vector<192x128xf32>
    %c0_5 = arith.constant 0 : index
    %c0_6 = arith.constant 0 : index
    %7 = vector.load %arg4[%c0_5, %c0_6] : memref<128x128xf32, #tpu.memory_space<vmem>>, vector<128x128xf32>
    %cst_7 = arith.constant dense<0.000000e+00> : vector<192x128xf32>
    %8 = tpu.matmul %6, %7, %cst_7 {dimension_numbers = #tpu.dot_dimension_numbers<[1], [0], [0], [1], [0, 0, 1, 1], [], []>} : vector<192x128xf32>, vector<128x128xf32>, vector<192x128xf32> -> vector<192x128xf32>
    %c0_8 = arith.constant 0 : index
    %c0_9 = arith.constant 0 : index
    %9 = vector.load %arg5[%c0_8, %c0_9] : memref<1x128xf32, #tpu.memory_space<vmem>>, vector<1x128xf32>
    %10 = vector.broadcast %9 : vector<1x128xf32> to vector<192x128xf32>
    %11 = arith.addf %8, %10 : vector<192x128xf32>
    %12 = math.tanh %11 : vector<192x128xf32>
    %c0_10 = arith.constant 0 : index
    %c0_11 = arith.constant 0 : index
    %13 = vector.load %arg6[%c0_10, %c0_11] : memref<128x128xf32, #tpu.memory_space<vmem>>, vector<128x128xf32>
    %cst_12 = arith.constant dense<0.000000e+00> : vector<192x128xf32>
    %14 = tpu.matmul %12, %13, %cst_12 {dimension_numbers = #tpu.dot_dimension_numbers<[1], [0], [0], [1], [0, 0, 1, 1], [], []>} : vector<192x128xf32>, vector<128x128xf32>, vector<192x128xf32> -> vector<192x128xf32>
    %c0_13 = arith.constant 0 : index
    %c0_14 = arith.constant 0 : index
    %15 = vector.load %arg7[%c0_13, %c0_14] : memref<1x128xf32, #tpu.memory_space<vmem>>, vector<1x128xf32>
    %16 = vector.broadcast %15 : vector<1x128xf32> to vector<192x128xf32>
    %17 = arith.addf %14, %16 : vector<192x128xf32>
    %c0_15 = arith.constant 0 : index
    %c0_16 = arith.constant 0 : index
    %18 = vector.load %arg8[%c0_15, %c0_16] : memref<192x128xf32, #tpu.memory_space<vmem>>, vector<192x128xf32>
    tpu.vector_store %arg8[%c0_15, %c0_16], %17 {strides = array<i32>} : memref<192x128xf32, #tpu.memory_space<vmem>>, vector<192x128xf32>,
    return
  }
  func.func @transform_0(%arg0: i32) -> (i32, i32) {
    %c0_i32 = arith.constant 0 : i32
    %c0_i32_0 = arith.constant 0 : i32
    return %arg0, %c0_i32 : i32, i32
  }
  func.func @transform_1(%arg0: i32) -> (i32, i32) {
    %c0_i32 = arith.constant 0 : i32
    %c0_i32_0 = arith.constant 0 : i32
    %c0_i32_1 = arith.constant 0 : i32
    return %c0_i32, %c0_i32_0 : i32, i32
  }
  func.func @transform_2(%arg0: i32) -> (i32, i32) {
    %c0_i32 = arith.constant 0 : i32
    %c0_i32_0 = arith.constant 0 : i32
    %c0_i32_1 = arith.constant 0 : i32
    return %c0_i32, %c0_i32_0 : i32, i32
  }
  func.func @transform_3(%arg0: i32) -> (i32, i32) {
    %c0_i32 = arith.constant 0 : i32
    %c0_i32_0 = arith.constant 0 : i32
    %c0_i32_1 = arith.constant 0 : i32
    return %c0_i32, %c0_i32_0 : i32, i32
  }
  func.func @transform_4(%arg0: i32) -> (i32, i32) {
    %c0_i32 = arith.constant 0 : i32
    %c0_i32_0 = arith.constant 0 : i32
    %c0_i32_1 = arith.constant 0 : i32
    return %c0_i32, %c0_i32_0 : i32, i32
  }
  func.func @transform_5(%arg0: i32) -> (i32, i32) {
    %c0_i32 = arith.constant 0 : i32
    %c0_i32_0 = arith.constant 0 : i32
    %c0_i32_1 = arith.constant 0 : i32
    return %c0_i32, %c0_i32_0 : i32, i32
  }
  func.func @transform_6(%arg0: i32) -> (i32, i32) {
    %c0_i32 = arith.constant 0 : i32
    %c0_i32_0 = arith.constant 0 : i32
    %c0_i32_1 = arith.constant 0 : i32
    return %c0_i32, %c0_i32_0 : i32, i32
  }
  func.func @transform_7(%arg0: i32) -> (i32, i32) {
    %c0_i32 = arith.constant 0 : i32
    %c0_i32_0 = arith.constant 0 : i32
    return %arg0, %c0_i32 : i32, i32
  }
}

</mosaic_0001>

<bundles_post_ra>
// kernel: surface_model_forward.1
= control target key start
LH: loop header
LB: loop body
LE: loop exit
PB: predicated region body
PF: predicated region fallthrough
CT: control target
= control target key end

     0   :  { %s1657_s24 = smov 0   ;;  %s1958_s0 = inlined_call_operand.vmem [shape: f32[384,16], index: 0, kind: input, shape index: {}]   ;;  %s1959_s1 = inlined_call_operand.vmem [shape: f32[16,128], index: 1, kind: input, shape index: {}]   ;;  %s1960_s2 = inlined_call_operand.vmem [shape: f32[1,128], index: 2, kind: input, shape index: {}]   ;;  %s1961_s3 = inlined_call_operand.vmem [shape: f32[128,128], index: 3, kind: input, shape index: {}]   ;;  %s1962_s4 = inlined_call_operand.vmem [shape: f32[1,128], index: 4, kind: input, shape index: {}]   ;;  %s1963_s5 = inlined_call_operand.vmem [shape: f32[128,128], index: 5, kind: input, shape index: {}]   ;;  %s1964_s6 = inlined_call_operand.vmem [shape: f32[1,128], index: 6, kind: input, shape index: {}]   ;;  %s1965_s7 = inlined_call_operand.vmem [shape: f32[384,128], index: 7, kind: output, shape index: {}]  }
   0x1 LB: > { %s1117_s25 = sadd.s32 4294967295, %s1615_s24   ;;  %p1121_p0 = scmp.ge.s32.totalorder %s1615_s24, 1  ;;  %s1615_s24 = sphi %s1657_s24, %s17_s24  }
   0x2   : > { %p238_p1 = scmp.lt.s32.totalorder %s1615_s24, 3 }
   0x4   : > { %p239_p2 = pnand %p1121_p0, %p238_p1 }
   0x5   : > { %v306_v0 = vld [vmem:[%s1959_s1] sm:$0xff] (!%p239_p2)  ;;  %v307_v1 = vld [vmem:[%s1959_s1 + $0x8] sm:$0xff] (!%p239_p2)  ;;  %s270_s30 = smul.u32 (!%p239_p2), 24, %s1117_s25  ;;  %vm315_vm0 = vcmask (!%p239_p2), 130048   ;;  %v599_v9 = vld [vmem:[%s1961_s3 + $0x10] sm:$0xff] (!%p239_p2) }
   0x6   : > { %242 = sbr.rel (%p239_p2) target bundleno = 732 (0x2dc), region = 48  ;;  %v597_v2 = vld [vmem:[%s1961_s3] sm:$0xff] (!%p239_p2)  ;;  %v1435_v3 = vpack.c.bf16 (!%p239_p2), %v307_v1, %v306_v0  ;;  %v598_v4 = vld [vmem:[%s1961_s3 + $0x8] sm:$0xff] (!%p239_p2)  ;;  %v600_v10 = vld [vmem:[%s1961_s3 + $0x18] sm:$0xff] (!%p239_p2) }
   0x7   : > { %p271_p3 = scmp.lt.s32.totalorder (!%p239_p2), %s270_s30, 47  ;;  %v1439_v5 = vpack.c.bf16 (!%p239_p2), %v598_v4, %v597_v2  ;;  %v1443_v15 = vpack.c.bf16 (!%p239_p2), %v600_v10, %v599_v9  ;;  %v601_v17 = vld [vmem:[%s1961_s3 + $0x20] sm:$0xff] (!%p239_p2)  ;;  %v602_v18 = vld [vmem:[%s1961_s3 + $0x28] sm:$0xff] (!%p239_p2)  ;;  %v603_v24 = vld [vmem:[%s1961_s3 + $0x30] sm:$0xff] (!%p239_p2) }
   0x8   : > { %1436 = vmatprep.subr.bf16.mxu0 (!%p239_p2), %v1435_v3  ;;  %1503 = vmatprep.subr.bf16.mxu1 (!%p239_p2), %v1435_v3  ;;  %v1447_v23 = vpack.c.bf16 (!%p239_p2), %v602_v18, %v601_v17  ;;  %v604_v25 = vld [vmem:[%s1961_s3 + $0x38] sm:$0xff] (!%p239_p2)  ;;  %v605_v39 = vld [vmem:[%s1961_s3 + $0x40] sm:$0xff] (!%p239_p2)  ;;  %v606_v40 = vld [vmem:[%s1961_s3 + $0x48] sm:$0xff] (!%p239_p2) }
   0x9   : > { %1438 = vmatpush3.bf16.msra.mxu0 (!%p239_p2), %v1435_v3  ;;  %1504 = vmatpush3.bf16.msra.mxu1 (!%p239_p2), %v1435_v3  ;;  %v1451_v30 = vpack.c.bf16 (!%p239_p2), %v604_v25, %v603_v24  ;;  %v1455_v41 = vpack.c.bf16 (!%p239_p2), %v606_v40, %v605_v39  ;;  %v607_v42 = vld [vmem:[%s1961_s3 + $0x50] sm:$0xff] (!%p239_p2)  ;;  %v608_v43 = vld [vmem:[%s1961_s3 + $0x58] sm:$0xff] (!%p239_p2)  ;;  %v609_v45 = vld [vmem:[%s1961_s3 + $0x60] sm:$0xff] (!%p239_p2) }
   0xa   : > { %1440 = vmatprep.subr.bf16.mxu1 (!%p239_p2), %v1439_v5  ;;  %v1459_v44 = vpack.c.bf16 (!%p239_p2), %v608_v43, %v607_v42  ;;  %v610_v46 = vld [vmem:[%s1961_s3 + $0x68] sm:$0xff] (!%p239_p2)  ;;  %v611_v48 = vld [vmem:[%s1961_s3 + $0x70] sm:$0xff] (!%p239_p2)  ;;  %v612_v49 = vld [vmem:[%s1961_s3 + $0x78] sm:$0xff] (!%p239_p2) }
   0xb   : > { %v1463_v47 = vpack.c.bf16 (!%p239_p2), %v610_v46, %v609_v45  ;;  %v1467_v50 = vpack.c.bf16 (!%p239_p2), %v612_v49, %v611_v48  ;;  %v829_v51 = vld [vmem:[%s1963_s5] sm:$0xff] (!%p239_p2)  ;;  %v830_v52 = vld [vmem:[%s1963_s5 + $0x8] sm:$0xff] (!%p239_p2)  ;;  %v831_v53 = vld [vmem:[%s1963_s5 + $0x10] sm:$0xff] (!%p239_p2) }
   0xc   : > { %v1471_v54 = vpack.c.bf16 (!%p239_p2), %v830_v52, %v829_v51  ;;  %v832_v55 = vld [vmem:[%s1963_s5 + $0x18] sm:$0xff] (!%p239_p2)  ;;  %v833_v57 = vld [vmem:[%s1963_s5 + $0x20] sm:$0xff] (!%p239_p2)  ;;  %v834_v58 = vld [vmem:[%s1963_s5 + $0x28] sm:$0xff] (!%p239_p2) }
   0xd   : > { %s1967_s30 = smov (!%p271_p3, %s270_s30), 47  ;;  %v1475_v56 = vpack.c.bf16 %v832_v55, %v831_v53  ;;  %v1479_v59 = vpack.c.bf16 %v834_v58, %v833_v57  ;;  %v835_v60 = vld [vmem:[%s1963_s5 + $0x30] sm:$0xff]  ;;  %v836_v61 = vld [vmem:[%s1963_s5 + $0x38] sm:$0xff]  ;;  %v837_v63 = vld [vmem:[%s1963_s5 + $0x40] sm:$0xff] }
   0xe   : > { %s1122_s12 = sshll.u32 %s1967_s30, 3  ;;  %1472 = vmatprep.subr.bf16.mxu0 %v1471_v54  ;;  %v1483_v62 = vpack.c.bf16 %v836_v61, %v835_v60  ;;  %v838_v0 = vld [vmem:[%s1963_s5 + $0x48] sm:$0xff]  ;;  %v1810_v2 = vld [vmem:[%s1960_s2] ss:$0 sm:$0xff] }
   0xf   : > { %s1685_s15 = scalar_lea.vmem %s1958_s0, %s1122_s12  ;;  %v1487_v1 = vpack.c.bf16 %v838_v0, %v837_v63  ;;  %s1905_s25 = scalar_lea.vmem %s1965_s7, %s1122_s12 }
  0x10   : > { %v282_v6 = vld [vmem:[%s1685_s15] sm:$0xff]  ;;  %v283_v7 = vld [vmem:[%s1685_s15 + $0x8] sm:$0xff]  ;;  %v284_v8 = vld [vmem:[%s1685_s15 + $0x10] sm:$0xff] }
  0x11   : > { %1263 = vmatprep.mubr.msk.f32.mxu0 %vm315_vm0, %v282_v6  ;;  %v285_v11 = vld [vmem:[%s1685_s15 + $0x18] sm:$0xff]  ;;  %v286_v12 = vld [vmem:[%s1685_s15 + $0x20] sm:$0xff]  ;;  %v299_v14 = vld [vmem:[%s1685_s15 + $0x88] sm:$0xff] }
  0x12   : > { %1264 = vmatmul.mubr.msk.f32.vlgmr.msra.gmra.mrb[0].mxu0 %vm315_vm0, %v283_v7  ;;  %v298_v13 = vld [vmem:[%s1685_s15 + $0x80] sm:$0xff]  ;;  %v300_v16 = vld [vmem:[%s1685_s15 + $0x90] sm:$0xff]  ;;  %v287_v19 = vld [vmem:[%s1685_s15 + $0x28] sm:$0xff] }
  0x13   : > { %1266 = vmatprep.mubr.msk.f32.mxu0 %vm315_vm0, %v284_v8  ;;  %1287 = vmatprep.mubr.msk.f32.mxu1 %vm315_vm0, %v298_v13  ;;  %v288_v20 = vld [vmem:[%s1685_s15 + $0x30] sm:$0xff]  ;;  %v301_v21 = vld [vmem:[%s1685_s15 + $0x98] sm:$0xff]  ;;  %v302_v22 = vld [vmem:[%s1685_s15 + $0xa0] sm:$0xff] }
  0x14   : > { %1288 = vmatmul.mubr.msk.f32.vlgmr.msra.gmra.mrb[0].mxu1 %vm315_vm0, %v299_v14  ;;  %v289_v26 = vld [vmem:[%s1685_s15 + $0x38] sm:$0xff]  ;;  %v290_v27 = vld [vmem:[%s1685_s15 + $0x40] sm:$0xff]  ;;  %v303_v28 = vld [vmem:[%s1685_s15 + $0xa8] sm:$0xff]  ;;  %1474 = vmatpush3.bf16.msra.mxu0 %v1471_v54 }
  0x15   : > { %1290 = vmatprep.mubr.msk.f32.mxu1 %vm315_vm0, %v300_v16  ;;  %1442 = vmatpush3.bf16.msra.mxu1 %v1439_v5  ;;  %v304_v29 = vld [vmem:[%s1685_s15 + $0xb0] sm:$0xff]  ;;  %v291_v31 = vld [vmem:[%s1685_s15 + $0x48] sm:$0xff]  ;;  %v305_v33 = vld [vmem:[%s1685_s15 + $0xb8] sm:$0xff] }
  0x16   : > { %1267 = vmatmul.mubr.msk.f32.gmra.mrb[2].mxu0 %vm315_vm0, %v285_v11  ;;  %1444 = vmatprep.subr.bf16.mxu1 %v1443_v15  ;;  %v292_v32 = vld [vmem:[%s1685_s15 + $0x50] sm:$0xff]  ;;  %v293_v34 = vld [vmem:[%s1685_s15 + $0x58] sm:$0xff]  ;;  %v294_v35 = vld [vmem:[%s1685_s15 + $0x60] sm:$0xff] }
  0x17   : > { %1269 = vmatprep.mubr.msk.f32.mxu0 %vm315_vm0, %v286_v12  ;;  %v295_v36 = vld [vmem:[%s1685_s15 + $0x68] sm:$0xff]  ;;  %v296_v37 = vld [vmem:[%s1685_s15 + $0x70] sm:$0xff]  ;;  %v297_v38 = vld [vmem:[%s1685_s15 + $0x78] sm:$0xff]  ;;  %1476 = vmatprep.subr.bf16.mxu0 %v1475_v56 }
  0x18   : > { %1291 = vmatmul.mubr.msk.f32.gmra.mrb[2].mxu1 %vm315_vm0, %v301_v21  ;;  %1478 = vmatpush3.bf16.msra.mxu0 %v1475_v56 }
  0x19   : > { %1293 = vmatprep.mubr.msk.f32.mxu1 %vm315_vm0, %v302_v22  ;;  %1446 = vmatpush3.bf16.msra.mxu1 %v1443_v15 }
  0x1a   : > { %1270 = vmatmul.mubr.msk.f32.gmra.mrb[4].mxu0 %vm315_vm0, %v287_v19  ;;  %1448 = vmatprep.subr.bf16.mxu1 %v1447_v23 }
  0x1b   : > { %1272 = vmatprep.mubr.msk.f32.mxu0 %vm315_vm0, %v288_v20  ;;  %1480 = vmatprep.subr.bf16.mxu0 %v1479_v59 }
  0x1c   : > { %1294 = vmatmul.mubr.msk.f32.gmra.mrb[4].mxu1 %vm315_vm0, %v303_v28  ;;  %1482 = vmatpush3.bf16.msra.mxu0 %v1479_v59 }
  0x1d   : > { %1296 = vmatprep.mubr.msk.f32.mxu1 %vm315_vm0, %v304_v29  ;;  %1450 = vmatpush3.bf16.msra.mxu1 %v1447_v23 }
  0x1e   : > { %1273 = vmatmul.mubr.msk.f32.gmra.mrb[6].mxu0 %vm315_vm0, %v289_v26  ;;  %1452 = vmatprep.subr.bf16.mxu1 %v1451_v30 }
  0x1f   : > { %1275 = vmatprep.mubr.msk.f32.mxu0 %vm315_vm0, %v290_v27  ;;  %1484 = vmatprep.subr.bf16.mxu0 %v1483_v62 }
  0x20   : > { %1297 = vmatmul.mubr.msk.f32.gmra.mrb[6].mxu1 %vm315_vm0, %v305_v33  ;;  %1486 = vmatpush3.bf16.msra.mxu0 %v1483_v62 }
  0x21   : > { %1454 = vmatpush3.bf16.msra.mxu1 %v1451_v30  ;;  %1488 = vmatprep.subr.bf16.mxu0 %v1487_v1 }
  0x22   : > { %1276 = vmatmul.mubr.msk.f32.gmra.mrb[8].mxu0 %vm315_vm0, %v291_v31  ;;  %1456 = vmatprep.subr.bf16.mxu1 %v1455_v41 }
  0x23   : > { %1278 = vmatprep.mubr.msk.f32.mxu0 %vm315_vm0, %v292_v32 }
  0x24   : > { %1490 = vmatpush3.bf16.msra.mxu0 %v1487_v1 }
  0x25   : > { %1458 = vmatpush3.bf16.msra.mxu1 %v1455_v41 }
  0x26   : > { %1279 = vmatmul.mubr.msk.f32.gmra.mrb[10].mxu0 %vm315_vm0, %v293_v34  ;;  %1460 = vmatprep.subr.bf16.mxu1 %v1459_v44 }
  0x27   : > { %1281 = vmatprep.mubr.msk.f32.mxu0 %vm315_vm0, %v294_v35 }
  0x29   : > { %1462 = vmatpush3.bf16.msra.mxu1 %v1459_v44 }
  0x2a   : > { %1282 = vmatmul.mubr.msk.f32.gmra.mrb[12].mxu0 %vm315_vm0, %v295_v36  ;;  %1464 = vmatprep.subr.bf16.mxu1 %v1463_v47 }
  0x2b   : > { %1284 = vmatprep.mubr.msk.f32.mxu0 %vm315_vm0, %v296_v37 }
  0x2d   : > { %1466 = vmatpush3.bf16.msra.mxu1 %v1463_v47 }
  0x2e   : > { %1285 = vmatmul.mubr.msk.f32.gmra.mrb[14].mxu0 %vm315_vm0, %v297_v38  ;;  %1468 = vmatprep.subr.bf16.mxu1 %v1467_v50 }
  0x31   : > { %1470 = vmatpush3.bf16.msra.mxu1 %v1467_v50 }
  0xe5   : > { %v1265_v3 = vpop.f32.mrb[0].mxu0 }
  0xe6   : > { %v460_v4 = vadd.f32 %v1265_v3, %v1810_v2  ;;  %v454_v5 = vpop.f32.mrb[1].mxu0 }
  0xe7   : > { %v455_v6 = vadd.f32 %v1810_v2, %v454_v5  ;;  %v1815_v10 = vpop.f32.mrb[0].mxu1 }
  0xe8   : > { %v534_v12 = vpop.f32.mrb[1].mxu1  ;;  %v540_v55 = vadd.f32 %v1815_v10, %v1810_v2 }
  0xe9   : > { %1513 = vtanh.f32 %v455_v6  ;;  %v1268_v7 = vpop.f32.mrb[2].mxu0  ;;  %v535_v47 = vadd.f32 %v1810_v2, %v534_v12  ;;  %v840_v12 = vld [vmem:[%s1963_s5 + $0x58] sm:$0xff] }
  0xea   : > { %1515 = vtanh.f32 %v460_v4  ;;  %v470_v8 = vadd.f32 %v1268_v7, %v1810_v2  ;;  %v464_v9 = vpop.f32.mrb[3].mxu0 }
  0xeb   : > { %v465_v11 = vadd.f32 %v1810_v2, %v464_v9  ;;  %v1819_v16 = vpop.f32.mrb[2].mxu1 }
  0xec   : > { %v544_v18 = vpop.f32.mrb[3].mxu1  ;;  %v550_v59 = vadd.f32 %v1819_v16, %v1810_v2 }
  0xed   : > { %1517 = vtanh.f32 %v465_v11  ;;  %v1271_v13 = vpop.f32.mrb[4].mxu0  ;;  %v545_v54 = vadd.f32 %v1810_v2, %v544_v18  ;;  %v844_v18 = vld [vmem:[%s1963_s5 + $0x78] sm:$0xff] }
  0xee   : > { %1519 = vtanh.f32 %v470_v8  ;;  %v480_v14 = vadd.f32 %v1271_v13, %v1810_v2  ;;  %v474_v15 = vpop.f32.mrb[5].mxu0 }
  0xef   : > { %v475_v17 = vadd.f32 %v1810_v2, %v474_v15  ;;  %v1823_v22 = vpop.f32.mrb[4].mxu1  ;;  %v842_v15 = vld [vmem:[%s1963_s5 + $0x68] sm:$0xff] }
  0xf0   : > { %v554_v25 = vpop.f32.mrb[5].mxu1  ;;  %v560_v0 = vadd.f32 %v1823_v22, %v1810_v2 }
  0xf1   : > { %1521 = vtanh.f32 %v475_v17  ;;  %v1274_v19 = vpop.f32.mrb[6].mxu0  ;;  %v555_v58 = vadd.f32 %v1810_v2, %v554_v25  ;;  %v843_v17 = vld [vmem:[%s1963_s5 + $0x70] sm:$0xff] }
  0xf2   : > { %1523 = vtanh.f32 %v480_v14  ;;  %v490_v20 = vadd.f32 %v1274_v19, %v1810_v2  ;;  %v484_v21 = vpop.f32.mrb[7].mxu0  ;;  %v841_v14 = vld [vmem:[%s1963_s5 + $0x60] sm:$0xff]  ;;  %v1499_v19 = vpack.c.bf16 %v844_v18, %v843_v17 }
  0xf3   : > { %v1514_v23 = vpop.eup %1513  ;;  %v485_v24 = vadd.f32 %v1810_v2, %v484_v21  ;;  %v1827_v30 = vpop.f32.mrb[6].mxu1  ;;  %v1495_v16 = vpack.c.bf16 %v842_v15, %v841_v14 }
  0xf4   : > { %v1516_v26 = vpop.eup %1515  ;;  %1331 = vmatprep.mubr.f32.mxu1 %v1514_v23  ;;  %v564_v33 = vpop.f32.mrb[7].mxu1  ;;  %v570_v4 = vadd.f32 %v1827_v30, %v1810_v2 }
  0xf5   : > { %1525 = vtanh.f32 %v485_v24  ;;  %v1277_v27 = vpop.f32.mrb[8].mxu0  ;;  %1332 = vmatmul.mubr.f32.vlgmr.msra.gmra.mrb[8].mxu1 %v1516_v26  ;;  %v565_v62 = vadd.f32 %v1810_v2, %v564_v33 }
  0xf6   : > { %1527 = vtanh.f32 %v490_v20  ;;  %v500_v28 = vadd.f32 %v1277_v27, %v1810_v2  ;;  %v494_v29 = vpop.f32.mrb[9].mxu0  ;;  %v1869_v20 = vld [vmem:[%s1962_s4] ss:$0 sm:$0xff] }
  0xf7   : > { %v1518_v31 = vpop.eup %1517  ;;  %v495_v32 = vadd.f32 %v1810_v2, %v494_v29 }
  0xf8   : > { %v1520_v34 = vpop.eup %1519  ;;  %1334 = vmatprep.mubr.f32.mxu1 %v1518_v31 }
  0xf9   : > { %1529 = vtanh.f32 %v495_v32  ;;  %v1280_v35 = vpop.f32.mrb[10].mxu0  ;;  %1335 = vmatmul.mubr.f32.gmra.mrb[10].mxu1 %v1520_v34 }
  0xfa   : > { %1531 = vtanh.f32 %v500_v28  ;;  %v510_v36 = vadd.f32 %v1280_v35, %v1810_v2  ;;  %v504_v37 = vpop.f32.mrb[11].mxu0 }
  0xfb   : > { %v1522_v38 = vpop.eup %1521  ;;  %v505_v39 = vadd.f32 %v1810_v2, %v504_v37 }
  0xfc   : > { %v1524_v40 = vpop.eup %1523  ;;  %1337 = vmatprep.mubr.f32.mxu1 %v1522_v38 }
  0xfd   : > { %1533 = vtanh.f32 %v505_v39  ;;  %v1283_v41 = vpop.f32.mrb[12].mxu0  ;;  %1338 = vmatmul.mubr.f32.gmra.mrb[12].mxu1 %v1524_v40 }
  0xfe   : > { %1535 = vtanh.f32 %v510_v36  ;;  %v520_v42 = vadd.f32 %v1283_v41, %v1810_v2  ;;  %v514_v43 = vpop.f32.mrb[13].mxu0 }
  0xff   : > { %v1526_v44 = vpop.eup %1525  ;;  %v515_v45 = vadd.f32 %v1810_v2, %v514_v43 }
 0x100   : > { %v1528_v46 = vpop.eup %1527  ;;  %1340 = vmatprep.mubr.f32.mxu1 %v1526_v44 }
 0x101   : > { %1537 = vtanh.f32 %v515_v45  ;;  %v1286_v48 = vpop.f32.mrb[14].mxu0  ;;  %1341 = vmatmul.mubr.f32.gmra.mrb[14].mxu1 %v1528_v46 }
 0x102   : > { %1539 = vtanh.f32 %v520_v42  ;;  %v530_v49 = vadd.f32 %v1286_v48, %v1810_v2  ;;  %v524_v50 = vpop.f32.mrb[15].mxu0 }
 0x103   : > { %v1530_v51 = vpop.eup %1529  ;;  %v525_v52 = vadd.f32 %v1810_v2, %v524_v50  ;;  %1541 = vtanh.f32 %v535_v47  ;;  %v839_v2 = vld [vmem:[%s1963_s5 + $0x50] sm:$0xff] }
 0x104   : > { %v1532_v53 = vpop.eup %1531  ;;  %1343 = vmatprep.mubr.f32.mxu1 %v1530_v51  ;;  %v1491_v13 = vpack.c.bf16 %v840_v12, %v839_v2 }
 0x105   : > { %1543 = vtanh.f32 %v525_v52  ;;  %1344 = vmatmul.mubr.f32.gmra.mrb[16].mxu1 %v1532_v53 }
 0x106   : > { %1545 = vtanh.f32 %v530_v49  ;;  %1492 = vmatprep.subr.bf16.mxu0 %v1491_v13 }
 0x107   : > { %v1534_v56 = vpop.eup %1533  ;;  %1547 = vtanh.f32 %v545_v54  ;;  %1494 = vmatpush3.bf16.msra.mxu0 %v1491_v13 }
 0x108   : > { %v1536_v57 = vpop.eup %1535  ;;  %1346 = vmatprep.mubr.f32.mxu1 %v1534_v56  ;;  %1549 = vtanh.f32 %v540_v55  ;;  %1496 = vmatprep.subr.bf16.mxu0 %v1495_v16 }
 0x109   : > { %1347 = vmatmul.mubr.f32.gmra.mrb[18].mxu1 %v1536_v57  ;;  %1551 = vtanh.f32 %v555_v58 }
 0x10a   : > { %1553 = vtanh.f32 %v550_v59 }
 0x10b   : > { %v1538_v60 = vpop.eup %1537  ;;  %1555 = vtanh.f32 %v565_v62  ;;  %1498 = vmatpush3.bf16.msra.mxu0 %v1495_v16 }
 0x10c   : > { %v1540_v61 = vpop.eup %1539  ;;  %1349 = vmatprep.mubr.f32.mxu1 %v1538_v60  ;;  %1557 = vtanh.f32 %v560_v0  ;;  %1500 = vmatprep.subr.bf16.mxu0 %v1499_v19 }
 0x10d   : > { %1350 = vmatmul.mubr.f32.gmra.mrb[20].mxu1 %v1540_v61  ;;  %v1542_v63 = vpop.eup %1541  ;;  %1559 = vtanh.f32 %v570_v4 }
 0x10f   : > { %v1544_v1 = vpop.eup %1543  ;;  %1502 = vmatpush3.bf16.msra.mxu0 %v1499_v19 }
 0x110   : > { %v1546_v3 = vpop.eup %1545  ;;  %1352 = vmatprep.mubr.f32.mxu1 %v1544_v1 }
 0x111   : > { %1353 = vmatmul.mubr.f32.gmra.mrb[22].mxu1 %v1546_v3  ;;  %v1548_v5 = vpop.eup %1547 }
 0x112   : > { %1355 = vmatprep.mubr.f32.mxu1 %v1542_v63  ;;  %v1550_v6 = vpop.eup %1549 }
 0x113   : > { %v1552_v7 = vpop.eup %1551 }
 0x114   : > { %v1554_v8 = vpop.eup %1553 }
 0x115   : > { %1356 = vmatmul.mubr.f32.gmra.mrb[24].mxu1 %v1550_v6  ;;  %v1556_v9 = vpop.eup %1555 }
 0x116   : > { %1358 = vmatprep.mubr.f32.mxu1 %v1548_v5  ;;  %v1558_v10 = vpop.eup %1557 }
 0x117   : > { %v1560_v11 = vpop.eup %1559 }
 0x119   : > { %1359 = vmatmul.mubr.f32.gmra.mrb[26].mxu1 %v1554_v8 }
 0x11a   : > { %1361 = vmatprep.mubr.f32.mxu1 %v1552_v7 }
 0x11d   : > { %1362 = vmatmul.mubr.f32.gmra.mrb[28].mxu1 %v1558_v10 }
 0x11e   : > { %1364 = vmatprep.mubr.f32.mxu1 %v1556_v9 }
 0x121   : > { %1365 = vmatmul.mubr.f32.gmra.mrb[30].mxu1 %v1560_v11 }
 0x1c8   : > { %v1333_v21 = vpop.f32.mrb[8].mxu1 }
 0x1c9   : > { %v692_v22 = vadd.f32 %v1333_v21, %v1869_v20  ;;  %v686_v23 = vpop.f32.mrb[9].mxu1 }
 0x1ca   : > { %v687_v24 = vadd.f32 %v1869_v20, %v686_v23 }
 0x1cc   : > { %1561 = vtanh.f32 %v687_v24  ;;  %v1336_v25 = vpop.f32.mrb[10].mxu1 }
 0x1cd   : > { %1563 = vtanh.f32 %v692_v22  ;;  %v702_v26 = vadd.f32 %v1336_v25, %v1869_v20  ;;  %v696_v27 = vpop.f32.mrb[11].mxu1 }
 0x1ce   : > { %v697_v28 = vadd.f32 %v1869_v20, %v696_v27 }
 0x1d0   : > { %1565 = vtanh.f32 %v697_v28  ;;  %v1339_v29 = vpop.f32.mrb[12].mxu1 }
 0x1d1   : > { %1567 = vtanh.f32 %v702_v26  ;;  %v712_v30 = vadd.f32 %v1339_v29, %v1869_v20  ;;  %v706_v31 = vpop.f32.mrb[13].mxu1 }
 0x1d2   : > { %v707_v32 = vadd.f32 %v1869_v20, %v706_v31 }
 0x1d4   : > { %1569 = vtanh.f32 %v707_v32  ;;  %v1342_v33 = vpop.f32.mrb[14].mxu1 }
 0x1d5   : > { %1571 = vtanh.f32 %v712_v30  ;;  %v722_v34 = vadd.f32 %v1342_v33, %v1869_v20  ;;  %v716_v35 = vpop.f32.mrb[15].mxu1 }
 0x1d6   : > { %v1562_v36 = vpop.eup %1561  ;;  %v717_v37 = vadd.f32 %v1869_v20, %v716_v35 }
 0x1d7   : > { %v1564_v38 = vpop.eup %1563  ;;  %1399 = vmatprep.mubr.f32.mxu0 %v1562_v36 }
 0x1d8   : > { %1573 = vtanh.f32 %v717_v37  ;;  %v1345_v39 = vpop.f32.mrb[16].mxu1  ;;  %1400 = vmatmul.mubr.f32.vlgmr.msra.gmra.mrb[16].mxu0 %v1564_v38 }
 0x1d9   : > { %1575 = vtanh.f32 %v722_v34  ;;  %v732_v40 = vadd.f32 %v1345_v39, %v1869_v20  ;;  %v726_v41 = vpop.f32.mrb[17].mxu1 }
 0x1da   : > { %v1566_v42 = vpop.eup %1565  ;;  %v727_v43 = vadd.f32 %v1869_v20, %v726_v41 }
 0x1db   : > { %v1568_v44 = vpop.eup %1567  ;;  %1402 = vmatprep.mubr.f32.mxu0 %v1566_v42 }
 0x1dc   : > { %1577 = vtanh.f32 %v727_v43  ;;  %v1348_v45 = vpop.f32.mrb[18].mxu1  ;;  %1403 = vmatmul.mubr.f32.gmra.mrb[18].mxu0 %v1568_v44 }
 0x1dd   : > { %1579 = vtanh.f32 %v732_v40  ;;  %v742_v46 = vadd.f32 %v1348_v45, %v1869_v20  ;;  %v736_v47 = vpop.f32.mrb[19].mxu1 }
 0x1de   : > { %v1570_v48 = vpop.eup %1569  ;;  %v737_v49 = vadd.f32 %v1869_v20, %v736_v47 }
 0x1df   : > { %v1572_v50 = vpop.eup %1571  ;;  %1405 = vmatprep.mubr.f32.mxu0 %v1570_v48 }
 0x1e0   : > { %1581 = vtanh.f32 %v737_v49  ;;  %v1351_v51 = vpop.f32.mrb[20].mxu1  ;;  %1406 = vmatmul.mubr.f32.gmra.mrb[20].mxu0 %v1572_v50 }
 0x1e1   : > { %1583 = vtanh.f32 %v742_v46  ;;  %v752_v52 = vadd.f32 %v1351_v51, %v1869_v20  ;;  %v746_v53 = vpop.f32.mrb[21].mxu1 }
 0x1e2   : > { %v1574_v54 = vpop.eup %1573  ;;  %v747_v55 = vadd.f32 %v1869_v20, %v746_v53 }
 0x1e3   : > { %v1576_v56 = vpop.eup %1575  ;;  %1408 = vmatprep.mubr.f32.mxu0 %v1574_v54 }
 0x1e4   : > { %1585 = vtanh.f32 %v747_v55  ;;  %v1354_v57 = vpop.f32.mrb[22].mxu1  ;;  %1409 = vmatmul.mubr.f32.gmra.mrb[22].mxu0 %v1576_v56 }
 0x1e5   : > { %1587 = vtanh.f32 %v752_v52  ;;  %v762_v58 = vadd.f32 %v1354_v57, %v1869_v20  ;;  %v756_v59 = vpop.f32.mrb[23].mxu1 }
 0x1e6   : > { %v1578_v60 = vpop.eup %1577  ;;  %v757_v61 = vadd.f32 %v1869_v20, %v756_v59 }
 0x1e7   : > { %v1580_v62 = vpop.eup %1579  ;;  %1411 = vmatprep.mubr.f32.mxu0 %v1578_v60 }
 0x1e8   : > { %1589 = vtanh.f32 %v757_v61  ;;  %v1357_v63 = vpop.f32.mrb[24].mxu1  ;;  %1412 = vmatmul.mubr.f32.gmra.mrb[24].mxu0 %v1580_v62 }
 0x1e9   : > { %1591 = vtanh.f32 %v762_v58  ;;  %v772_v0 = vadd.f32 %v1357_v63, %v1869_v20  ;;  %v766_v1 = vpop.f32.mrb[25].mxu1 }
 0x1ea   : > { %v1582_v3 = vpop.eup %1581  ;;  %v767_v4 = vadd.f32 %v1869_v20, %v766_v1 }
 0x1eb   : > { %v1584_v5 = vpop.eup %1583  ;;  %1414 = vmatprep.mubr.f32.mxu0 %v1582_v3 }
 0x1ec   : > { %1593 = vtanh.f32 %v767_v4  ;;  %v1360_v6 = vpop.f32.mrb[26].mxu1  ;;  %1415 = vmatmul.mubr.f32.gmra.mrb[26].mxu0 %v1584_v5 }
 0x1ed   : > { %1595 = vtanh.f32 %v772_v0  ;;  %v782_v7 = vadd.f32 %v1360_v6, %v1869_v20  ;;  %v776_v8 = vpop.f32.mrb[27].mxu1 }
 0x1ee   : > { %v1586_v9 = vpop.eup %1585  ;;  %v777_v10 = vadd.f32 %v1869_v20, %v776_v8 }
 0x1ef   : > { %v1588_v11 = vpop.eup %1587  ;;  %1417 = vmatprep.mubr.f32.mxu0 %v1586_v9 }
 0x1f0   : > { %1597 = vtanh.f32 %v777_v10  ;;  %v1363_v2 = vpop.f32.mrb[28].mxu1  ;;  %1418 = vmatmul.mubr.f32.gmra.mrb[28].mxu0 %v1588_v11 }
 0x1f1   : > { %1599 = vtanh.f32 %v782_v7  ;;  %v792_v12 = vadd.f32 %v1363_v2, %v1869_v20  ;;  %v786_v13 = vpop.f32.mrb[29].mxu1 }
 0x1f2   : > { %v1590_v14 = vpop.eup %1589  ;;  %v787_v15 = vadd.f32 %v1869_v20, %v786_v13 }
 0x1f3   : > { %v1592_v16 = vpop.eup %1591  ;;  %1420 = vmatprep.mubr.f32.mxu0 %v1590_v14 }
 0x1f4   : > { %1601 = vtanh.f32 %v787_v15  ;;  %v1366_v17 = vpop.f32.mrb[30].mxu1  ;;  %1421 = vmatmul.mubr.f32.gmra.mrb[30].mxu0 %v1592_v16 }
 0x1f5   : > { %1603 = vtanh.f32 %v792_v12  ;;  %v802_v18 = vadd.f32 %v1366_v17, %v1869_v20  ;;  %v796_v19 = vpop.f32.mrb[31].mxu1 }
 0x1f6   : > { %v1594_v21 = vpop.eup %1593  ;;  %v797_v22 = vadd.f32 %v1869_v20, %v796_v19  ;;  %v1898_v20 = vld [vmem:[%s1964_s6] ss:$0 sm:$0xff] }
 0x1f7   : > { %v1596_v23 = vpop.eup %1595  ;;  %1423 = vmatprep.mubr.f32.mxu0 %v1594_v21 }
 0x1f8   : > { %1605 = vtanh.f32 %v797_v22  ;;  %1424 = vmatmul.mubr.f32.gmra.mrb[32].mxu0 %v1596_v23 }
 0x1f9   : > { %1607 = vtanh.f32 %v802_v18 }
 0x1fa   : > { %v1598_v24 = vpop.eup %1597 }
 0x1fb   : > { %v1600_v25 = vpop.eup %1599  ;;  %1426 = vmatprep.mubr.f32.mxu0 %v1598_v24 }
 0x1fc   : > { %1427 = vmatmul.mubr.f32.gmra.mrb[34].mxu0 %v1600_v25 }
 0x1fe   : > { %v1602_v26 = vpop.eup %1601 }
 0x1ff   : > { %v1604_v27 = vpop.eup %1603  ;;  %1429 = vmatprep.mubr.f32.mxu0 %v1602_v26 }
 0x200   : > { %1430 = vmatmul.mubr.f32.gmra.mrb[36].mxu0 %v1604_v27 }
 0x202   : > { %v1606_v28 = vpop.eup %1605 }
 0x203   : > { %v1608_v29 = vpop.eup %1607  ;;  %1432 = vmatprep.mubr.f32.mxu0 %v1606_v28 }
 0x204   : > { %1433 = vmatmul.mubr.f32.gmra.mrb[38].mxu0 %v1608_v29 }
 0x2ab   : > { %v1401_v30 = vpop.f32.mrb[16].mxu0 }
 0x2ac   : > { %v924_v31 = vadd.f32 %v1401_v30, %v1898_v20  ;;  %v918_v32 = vpop.f32.mrb[17].mxu0 }
 0x2ad   : > { %v919_v33 = vadd.f32 %v1898_v20, %v918_v32 }
 0x2ae   : > { %1038 = vst [vmem:[%s1905_s25 + $0x8] sm:$0xff] %v924_v31 }
 0x2af   : > { %1037 = vst [vmem:[%s1905_s25] sm:$0xff] %v919_v33  ;;  %v1404_v34 = vpop.f32.mrb[18].mxu0 }
 0x2b0   : > { %v934_v35 = vadd.f32 %v1404_v34, %v1898_v20  ;;  %v928_v36 = vpop.f32.mrb[19].mxu0 }
 0x2b1   : > { %v929_v37 = vadd.f32 %v1898_v20, %v928_v36 }
 0x2b2   : > { %1040 = vst [vmem:[%s1905_s25 + $0x18] sm:$0xff] %v934_v35 }
 0x2b3   : > { %1039 = vst [vmem:[%s1905_s25 + $0x10] sm:$0xff] %v929_v37  ;;  %v1407_v38 = vpop.f32.mrb[20].mxu0 }
 0x2b4   : > { %v944_v39 = vadd.f32 %v1407_v38, %v1898_v20  ;;  %v938_v40 = vpop.f32.mrb[21].mxu0 }
 0x2b5   : > { %v939_v41 = vadd.f32 %v1898_v20, %v938_v40 }
 0x2b6   : > { %1042 = vst [vmem:[%s1905_s25 + $0x28] sm:$0xff] %v944_v39 }
 0x2b7   : > { %1041 = vst [vmem:[%s1905_s25 + $0x20] sm:$0xff] %v939_v41  ;;  %v1410_v42 = vpop.f32.mrb[22].mxu0 }
 0x2b8   : > { %v954_v43 = vadd.f32 %v1410_v42, %v1898_v20  ;;  %v948_v44 = vpop.f32.mrb[23].mxu0 }
 0x2b9   : > { %v949_v45 = vadd.f32 %v1898_v20, %v948_v44 }
 0x2ba   : > { %1044 = vst [vmem:[%s1905_s25 + $0x38] sm:$0xff] %v954_v43 }
 0x2bb   : > { %1043 = vst [vmem:[%s1905_s25 + $0x30] sm:$0xff] %v949_v45  ;;  %v1413_v46 = vpop.f32.mrb[24].mxu0 }
 0x2bc   : > { %v964_v47 = vadd.f32 %v1413_v46, %v1898_v20  ;;  %v958_v48 = vpop.f32.mrb[25].mxu0 }
 0x2bd   : > { %v959_v49 = vadd.f32 %v1898_v20, %v958_v48 }
 0x2be   : > { %1046 = vst [vmem:[%s1905_s25 + $0x48] sm:$0xff] %v964_v47 }
 0x2bf   : > { %1045 = vst [vmem:[%s1905_s25 + $0x40] sm:$0xff] %v959_v49  ;;  %v1416_v50 = vpop.f32.mrb[26].mxu0 }
 0x2c0   : > { %v974_v51 = vadd.f32 %v1416_v50, %v1898_v20  ;;  %v968_v52 = vpop.f32.mrb[27].mxu0 }
 0x2c1   : > { %v969_v53 = vadd.f32 %v1898_v20, %v968_v52 }
 0x2c2   : > { %1048 = vst [vmem:[%s1905_s25 + $0x58] sm:$0xff] %v974_v51 }
 0x2c3   : > { %1047 = vst [vmem:[%s1905_s25 + $0x50] sm:$0xff] %v969_v53  ;;  %v1419_v54 = vpop.f32.mrb[28].mxu0 }
 0x2c4   : > { %v984_v55 = vadd.f32 %v1419_v54, %v1898_v20  ;;  %v978_v56 = vpop.f32.mrb[29].mxu0 }
 0x2c5   : > { %v979_v57 = vadd.f32 %v1898_v20, %v978_v56 }
 0x2c6   : > { %1050 = vst [vmem:[%s1905_s25 + $0x68] sm:$0xff] %v984_v55 }
 0x2c7   : > { %1049 = vst [vmem:[%s1905_s25 + $0x60] sm:$0xff] %v979_v57  ;;  %v1422_v58 = vpop.f32.mrb[30].mxu0 }
 0x2c8   : > { %v994_v59 = vadd.f32 %v1422_v58, %v1898_v20  ;;  %v988_v60 = vpop.f32.mrb[31].mxu0 }
 0x2c9   : > { %v989_v61 = vadd.f32 %v1898_v20, %v988_v60 }
 0x2ca   : > { %1052 = vst [vmem:[%s1905_s25 + $0x78] sm:$0xff] %v994_v59 }
 0x2cb   : > { %1051 = vst [vmem:[%s1905_s25 + $0x70] sm:$0xff] %v989_v61  ;;  %v1425_v62 = vpop.f32.mrb[32].mxu0 }
 0x2cc   : > { %v1004_v63 = vadd.f32 %v1425_v62, %v1898_v20  ;;  %v998_v0 = vpop.f32.mrb[33].mxu0 }
 0x2cd   : > { %v999_v1 = vadd.f32 %v1898_v20, %v998_v0 }
 0x2ce   : > { %1054 = vst [vmem:[%s1905_s25 + $0x88] sm:$0xff] %v1004_v63 }
 0x2cf   : > { %1053 = vst [vmem:[%s1905_s25 + $0x80] sm:$0xff] %v999_v1  ;;  %v1428_v3 = vpop.f32.mrb[34].mxu0 }
 0x2d0   : > { %v1014_v4 = vadd.f32 %v1428_v3, %v1898_v20  ;;  %v1008_v5 = vpop.f32.mrb[35].mxu0 }
 0x2d1   : > { %v1009_v6 = vadd.f32 %v1898_v20, %v1008_v5 }
 0x2d2   : > { %1056 = vst [vmem:[%s1905_s25 + $0x98] sm:$0xff] %v1014_v4 }
 0x2d3   : > { %1055 = vst [vmem:[%s1905_s25 + $0x90] sm:$0xff] %v1009_v6  ;;  %v1431_v7 = vpop.f32.mrb[36].mxu0 }
 0x2d4   : > { %v1024_v8 = vadd.f32 %v1431_v7, %v1898_v20  ;;  %v1018_v9 = vpop.f32.mrb[37].mxu0 }
 0x2d5   : > { %v1019_v10 = vadd.f32 %v1898_v20, %v1018_v9 }
 0x2d6   : > { %1058 = vst [vmem:[%s1905_s25 + $0xa8] sm:$0xff] %v1024_v8 }
 0x2d7   : > { %1057 = vst [vmem:[%s1905_s25 + $0xa0] sm:$0xff] %v1019_v10  ;;  %v1434_v11 = vpop.f32.mrb[38].mxu0 }
 0x2d8   : > { %v1034_v2 = vadd.f32 %v1434_v11, %v1898_v20  ;;  %v1028_v12 = vpop.f32.mrb[39].mxu0 }
 0x2d9   : > { %v1029_v13 = vadd.f32 %v1898_v20, %v1028_v12 }
 0x2da   : > { %1060 = vst [vmem:[%s1905_s25 + $0xb8] sm:$0xff] %v1034_v2 }
 0x2db   : > { %1059 = vst [vmem:[%s1905_s25 + $0xb0] sm:$0xff] %v1029_v13 }
 0x2dc PF: > { %s17_s24 = sadd.s32 1, %s1615_s24  }
 0x2dd   : > { %p14_p4 = scmp.ge.s32.totalorder %s17_s24, 4  }
 0x2df   :  { %16 = sbr.rel (!%p14_p4) target bundleno = 1 (0x1), region = 78 }

</bundles_post_ra>
